<compile_context>
chip_gen: v5e
topology: v5e:2x2
jax: 0.10.0
libtpu: 0.0.40
codegen_flags: <defaults>
</compile_context>

<pallas_src>
import functools

import jax
import jax.numpy as jnp
from jax.experimental import pallas as pl
from jax.experimental.pallas import tpu as pltpu

_LANES = 128


def _round_up(x: int, m: int) -> int:
    return ((x + m - 1) // m) * m


def _ce_loss_kernel(y_ref, z_ref, nll_ref, m_s, s_s, t_s):
    # y_ref:   (TB, 1)   int32 labels (VMEM, tiny)
    # z_ref:   (TB, TC)  logits tile (native dtype, cast to f32 in-kernel)
    # nll_ref: (TB, 128) f32 per-row NLL, broadcast across lanes (lane-dense store)
    # m_s/s_s/t_s: (TB, 1) f32 scratch: running max, running sum(exp), target logit
    j = pl.program_id(1)
    nj = pl.num_programs(1)

    @pl.when(j == 0)
    def _():
        m_s[...] = jnp.full_like(m_s, -jnp.inf)
        s_s[...] = jnp.zeros_like(s_s)
        t_s[...] = jnp.zeros_like(t_s)

    z = z_ref[...].astype(jnp.float32)          # (TB, TC) — exp/sum kept in f32
    y = y_ref[...]                              # (TB, 1) int32

    # Online log-sum-exp over class tiles (flash-softmax style).
    m_prev = m_s[...]
    m_new = jnp.maximum(m_prev, jnp.max(z, axis=-1, keepdims=True))
    alpha = jnp.exp(m_prev - m_new)
    s_s[...] = alpha * s_s[...] + jnp.sum(jnp.exp(z - m_new), axis=-1,
                                          keepdims=True)
    m_s[...] = m_new

    # Gather the target logit: each row's label falls in exactly one class tile.
    tb, tc = z.shape
    cls = jax.lax.broadcasted_iota(jnp.int32, (tb, tc), 1) + j * tc
    t_s[...] += jnp.sum(jnp.where(cls == y, z, 0.0), axis=-1, keepdims=True)

    @pl.when(j == nj - 1)
    def _():
        nll = m_s[...] + jnp.log(s_s[...]) - t_s[...]        # (TB, 1)
        nll_ref[...] = jnp.broadcast_to(nll, nll_ref.shape)  # lane-dense write


@functools.partial(jax.jit, static_argnames=("tb", "tc"))
def cross_entropy_loss(y_pred, y_true, *, tb: int = 256, tc: int = 2048):
    """y_pred: (*batch, C) float (any dtype), y_true: (*batch,) int -> f32 loss."""
    C = y_pred.shape[-1]
    z = y_pred.reshape(-1, C)                       # native dtype on the wire
    y = y_true.reshape(-1).astype(jnp.int32)
    B = z.shape[0]

    # Tile sizes: clamp to the (padded) problem size; TB mult of 8, TC mult of 128.
    TB = min(tb, _round_up(B, 8))
    TC = min(tc, _round_up(C, _LANES))
    B_pad = _round_up(B, TB)
    C_pad = _round_up(C, TC)

    pad_val = float(jnp.finfo(z.dtype).min)         # exp(pad - max) == 0, no NaN
    if C_pad != C:
        z = jnp.pad(z, ((0, 0), (0, C_pad - C)), constant_values=pad_val)
    if B_pad != B:
        z = jnp.pad(z, ((0, B_pad - B), (0, 0)), constant_values=pad_val)
        y = jnp.pad(y, (0, B_pad - B))              # padded rows dropped from mean

    y2 = y.reshape(B_pad, 1)

    grid = (B_pad // TB, C_pad // TC)               # (batch: parallel, classes: last)

    out = pl.pallas_call(
        _ce_loss_kernel,
        out_shape=jax.ShapeDtypeStruct((B_pad, _LANES), jnp.float32),
        grid_spec=pltpu.PrefetchScalarGridSpec(
            num_scalar_prefetch=0,
            grid=grid,
            in_specs=[
                pl.BlockSpec((TB, 1), lambda i, j: (i, 0)),    # labels
                pl.BlockSpec((TB, TC), lambda i, j: (i, j)),   # logits
            ],
            out_specs=pl.BlockSpec((TB, _LANES), lambda i, j: (i, 0)),
            scratch_shapes=[
                pltpu.VMEM((TB, 1), jnp.float32),   # running max
                pltpu.VMEM((TB, 1), jnp.float32),   # running sum(exp)
                pltpu.VMEM((TB, 1), jnp.float32),   # gathered target logit
            ],
        ),
        compiler_params=pltpu.CompilerParams(
            dimension_semantics=("parallel", "arbitrary"),
        ),
    )(y2, z)

    nll = out[:B, 0]                                # lane 0 holds the per-row NLL
    return jnp.mean(nll)
    # TODO(synk): class weights / ignore_index / label_smoothing / reduction!='mean'
    # are not part of this module and are not implemented.


if __name__ == "__main__":
    key = jax.random.PRNGKey(0)
    kz, ky = jax.random.split(key)

    B, C = 8, 32
    y_pred = jax.random.normal(kz, (B, C), dtype=jnp.float32)
    y_true = jax.random.randint(ky, (B,), 0, C, dtype=jnp.int32)

    loss = cross_entropy_loss(y_pred, y_true)
    jax.block_until_ready(loss)

    # Reference: same formula as the PyTorch module (plain softmax + NLL mean).
    ez = jnp.exp(y_pred.astype(jnp.float32))
    sm = ez / jnp.sum(ez, axis=-1, keepdims=True)
    ref = -jnp.mean(jnp.log(sm[jnp.arange(B), y_true]))
    assert jnp.allclose(loss, ref, rtol=1e-5, atol=1e-5), (loss, ref)

    print("KERNEL_OK")
</pallas_src>

<mosaic_0001>
module attributes {stable_mosaic.version = 11 : i64} {
  func.func @_ce_loss_kernel(%arg0: i32, %arg1: i32, %arg2: memref<8x1xi32, #tpu.memory_space<vmem>>, %arg3: memref<8x128xf32, #tpu.memory_space<vmem>>, %arg4: memref<8x128xf32, #tpu.memory_space<vmem>>, %arg5: memref<8x1xf32, #tpu.memory_space<vmem>>, %arg6: memref<8x1xf32, #tpu.memory_space<vmem>>, %arg7: memref<8x1xf32, #tpu.memory_space<vmem>>) attributes {dimension_semantics = [#tpu.dimension_semantics<parallel>, #tpu.dimension_semantics<arbitrary>], iteration_bounds = array<i64: 1, 1>, scalar_prefetch = 0 : i64, scratch_operands = 3 : i64, tpu.core_type = #tpu.core_type<tc>, window_params = [{transform_indices = @transform_0, window_bounds = array<i64: 8, 1>}, {transform_indices = @transform_1, window_bounds = array<i64: 8, 128>}, {transform_indices = @transform_2, window_bounds = array<i64: 8, 128>}]} {
    %c0_i32 = arith.constant 0 : i32
    %0 = arith.cmpi eq, %arg1, %c0_i32 : i32
    %1 = arith.extui %0 : i1 to i32
    %c0_i32_0 = arith.constant 0 : i32
    %2 = arith.cmpi ne, %1, %c0_i32_0 : i32
    scf.if %2 {
      %cst_21 = arith.constant 0xFF800000 : f32
      %37 = vector.broadcast %cst_21 : f32 to vector<8x1xf32>
      %c0_22 = arith.constant 0 : index
      %c0_23 = arith.constant 0 : index
      %38 = vector.load %arg5[%c0_22, %c0_23] : memref<8x1xf32, #tpu.memory_space<vmem>>, vector<8x1xf32>
      tpu.vector_store %arg5[%c0_22, %c0_23], %37 {strides = array<i32>} : memref<8x1xf32, #tpu.memory_space<vmem>>, vector<8x1xf32>,
      %cst_24 = arith.constant 0.000000e+00 : f32
      %39 = vector.broadcast %cst_24 : f32 to vector<8x1xf32>
      %c0_25 = arith.constant 0 : index
      %c0_26 = arith.constant 0 : index
      %40 = vector.load %arg6[%c0_25, %c0_26] : memref<8x1xf32, #tpu.memory_space<vmem>>, vector<8x1xf32>
      tpu.vector_store %arg6[%c0_25, %c0_26], %39 {strides = array<i32>} : memref<8x1xf32, #tpu.memory_space<vmem>>, vector<8x1xf32>,
      %cst_27 = arith.constant 0.000000e+00 : f32
      %41 = vector.broadcast %cst_27 : f32 to vector<8x1xf32>
      %c0_28 = arith.constant 0 : index
      %c0_29 = arith.constant 0 : index
      %42 = vector.load %arg7[%c0_28, %c0_29] : memref<8x1xf32, #tpu.memory_space<vmem>>, vector<8x1xf32>
      tpu.vector_store %arg7[%c0_28, %c0_29], %41 {strides = array<i32>} : memref<8x1xf32, #tpu.memory_space<vmem>>, vector<8x1xf32>,
    } else {
    }
    %c0 = arith.constant 0 : index
    %c0_1 = arith.constant 0 : index
    %3 = vector.load %arg3[%c0, %c0_1] : memref<8x128xf32, #tpu.memory_space<vmem>>, vector<8x128xf32>
    %c0_2 = arith.constant 0 : index
    %c0_3 = arith.constant 0 : index
    %4 = vector.load %arg2[%c0_2, %c0_3] : memref<8x1xi32, #tpu.memory_space<vmem>>, vector<8x1xi32>
    %c0_4 = arith.constant 0 : index
    %c0_5 = arith.constant 0 : index
    %5 = vector.load %arg5[%c0_4, %c0_5] : memref<8x1xf32, #tpu.memory_space<vmem>>, vector<8x1xf32>
    %cst = arith.constant dense<0xFF800000> : vector<8xf32>
    %6 = vector.multi_reduction <maximumf>, %3, %cst [1] : vector<8x128xf32> to vector<8xf32>
    %7 = vector.shape_cast %6 : vector<8xf32> to vector<8x1xf32>
    %8 = arith.maximumf %5, %7 : vector<8x1xf32>
    %9 = arith.subf %5, %8 : vector<8x1xf32>
    %10 = math.exp %9 : vector<8x1xf32>
    %c0_6 = arith.constant 0 : index
    %c0_7 = arith.constant 0 : index
    %11 = vector.load %arg6[%c0_6, %c0_7] : memref<8x1xf32, #tpu.memory_space<vmem>>, vector<8x1xf32>
    %12 = arith.mulf %10, %11 : vector<8x1xf32>
    %13 = vector.broadcast %8 : vector<8x1xf32> to vector<8x128xf32>
    %14 = arith.subf %3, %13 : vector<8x128xf32>
    %15 = math.exp %14 : vector<8x128xf32>
    %cst_8 = arith.constant dense<0.000000e+00> : vector<8xf32>
    %16 = vector.multi_reduction <add>, %15, %cst_8 [1] : vector<8x128xf32> to vector<8xf32>
    %17 = vector.shape_cast %16 : vector<8xf32> to vector<8x1xf32>
    %18 = arith.addf %12, %17 : vector<8x1xf32>
    %c0_9 = arith.constant 0 : index
    %c0_10 = arith.constant 0 : index
    %19 = vector.load %arg6[%c0_9, %c0_10] : memref<8x1xf32, #tpu.memory_space<vmem>>, vector<8x1xf32>
    tpu.vector_store %arg6[%c0_9, %c0_10], %18 {strides = array<i32>} : memref<8x1xf32, #tpu.memory_space<vmem>>, vector<8x1xf32>,
    %c0_11 = arith.constant 0 : index
    %c0_12 = arith.constant 0 : index
    %20 = vector.load %arg5[%c0_11, %c0_12] : memref<8x1xf32, #tpu.memory_space<vmem>>, vector<8x1xf32>
    tpu.vector_store %arg5[%c0_11, %c0_12], %8 {strides = array<i32>} : memref<8x1xf32, #tpu.memory_space<vmem>>, vector<8x1xf32>,
    %21 = tpu.iota {dimensions = array<i32: 1>} : vector<8x128xi32>
    %c128_i32 = arith.constant 128 : i32
    %22 = arith.muli %arg1, %c128_i32 : i32
    %23 = vector.broadcast %22 : i32 to vector<8x128xi32>
    %24 = arith.addi %21, %23 : vector<8x128xi32>
    %c0_13 = arith.constant 0 : index
    %c0_14 = arith.constant 0 : index
    %25 = vector.load %arg7[%c0_13, %c0_14] : memref<8x1xf32, #tpu.memory_space<vmem>>, vector<8x1xf32>
    %26 = vector.broadcast %4 : vector<8x1xi32> to vector<8x128xi32>
    %27 = arith.cmpi eq, %24, %26 : vector<8x128xi32>
    %cst_15 = arith.constant 0.000000e+00 : f32
    %28 = vector.broadcast %cst_15 : f32 to vector<8x128xf32>
    %29 = arith.select %27, %3, %28 : vector<8x128xi1>, vector<8x128xf32>
    %cst_16 = arith.constant dense<0.000000e+00> : vector<8xf32>
    %30 = vector.multi_reduction <add>, %29, %cst_16 [1] : vector<8x128xf32> to vector<8xf32>
    %31 = vector.shape_cast %30 : vector<8xf32> to vector<8x1xf32>
    %32 = arith.addf %25, %31 : vector<8x1xf32>
    %c0_17 = arith.constant 0 : index
    %c0_18 = arith.constant 0 : index
    %33 = vector.load %arg7[%c0_17, %c0_18] : memref<8x1xf32, #tpu.memory_space<vmem>>, vector<8x1xf32>
    tpu.vector_store %arg7[%c0_17, %c0_18], %32 {strides = array<i32>} : memref<8x1xf32, #tpu.memory_space<vmem>>, vector<8x1xf32>,
    %c0_i32_19 = arith.constant 0 : i32
    %34 = arith.cmpi eq, %arg1, %c0_i32_19 : i32
    %35 = arith.extui %34 : i1 to i32
    %c0_i32_20 = arith.constant 0 : i32
    %36 = arith.cmpi ne, %35, %c0_i32_20 : i32
    scf.if %36 {
      %c0_21 = arith.constant 0 : index
      %c0_22 = arith.constant 0 : index
      %37 = vector.load %arg5[%c0_21, %c0_22] : memref<8x1xf32, #tpu.memory_space<vmem>>, vector<8x1xf32>
      %c0_23 = arith.constant 0 : index
      %c0_24 = arith.constant 0 : index
      %38 = vector.load %arg6[%c0_23, %c0_24] : memref<8x1xf32, #tpu.memory_space<vmem>>, vector<8x1xf32>
      %39 = math.log %38 : vector<8x1xf32>
      %40 = arith.addf %37, %39 : vector<8x1xf32>
      %c0_25 = arith.constant 0 : index
      %c0_26 = arith.constant 0 : index
      %41 = vector.load %arg7[%c0_25, %c0_26] : memref<8x1xf32, #tpu.memory_space<vmem>>, vector<8x1xf32>
      %42 = arith.subf %40, %41 : vector<8x1xf32>
      %43 = vector.shape_cast %42 : vector<8x1xf32> to vector<8x1xf32>
      %44 = vector.broadcast %43 : vector<8x1xf32> to vector<8x128xf32>
      %c0_27 = arith.constant 0 : index
      %c0_28 = arith.constant 0 : index
      %45 = vector.load %arg4[%c0_27, %c0_28] : memref<8x128xf32, #tpu.memory_space<vmem>>, vector<8x128xf32>
      tpu.vector_store %arg4[%c0_27, %c0_28], %44 {strides = array<i32>} : memref<8x128xf32, #tpu.memory_space<vmem>>, vector<8x128xf32>,
    } else {
    }
    return
  }
  func.func @transform_0(%arg0: i32, %arg1: i32) -> (i32, i32) {
    %c0_i32 = arith.constant 0 : i32
    %c0_i32_0 = arith.constant 0 : i32
    return %arg0, %c0_i32 : i32, i32
  }
  func.func @transform_1(%arg0: i32, %arg1: i32) -> (i32, i32) {
    %c0_i32 = arith.constant 0 : i32
    return %arg0, %arg1 : i32, i32
  }
  func.func @transform_2(%arg0: i32, %arg1: i32) -> (i32, i32) {
    %c0_i32 = arith.constant 0 : i32
    %c0_i32_0 = arith.constant 0 : i32
    return %arg0, %c0_i32 : i32, i32
  }
}

</mosaic_0001>

<bundles_post_ra>
// kernel: cross_entropy_loss.1
= control target key start
LH: loop header
LB: loop body
LE: loop exit
PB: predicated region body
PF: predicated region fallthrough
CT: control target
= control target key end

     0   :  { %vm15_vm0 = vcmask 7168   ;;  %v91_v1 = vmov -inf   ;;  %v92_v2 = vmov 0   ;;  %v93_v3 = vmov 0.0   ;;  %s124_s1 = inlined_call_operand.vmem [shape: f32[8,128], index: 1, kind: input, shape index: {}]   ;;  %s125_s0 = inlined_call_operand.vmem [shape: s32[8,1], index: 0, kind: input, shape index: {}]   ;;  %s126_s2 = inlined_call_operand.vmem [shape: f32[8,128], index: 2, kind: output, shape index: {}]  }
   0x1   :  { %v19_v0 = vld [vmem:[%s124_s1] sm:$0xff]  ;;  %16 = vst.msk [vmem:[#allocation2] sm:$0xff] %vm15_vm0, %v91_v1  ;;  %82 = vset.pattern.permute.xlu0 %v92_v2  ;;  %83 = vset.pattern.permute.xlu1 %v92_v2  ;;  %v44_v9 = vlaneseq }
   0x2   :  { %22 = vmax.xlane.f32.xlu0 %v19_v0  ;;  %84 = vset.pattern.permute.xlu2 %v92_v2  ;;  %17 = vst.msk [vmem:[#allocation3] sm:$0xff] %vm15_vm0, %v93_v3  ;;  %v20_v4 = vld [vmem:[%s125_s0] sm:$0xff] }
   0x3   :  { %18 = vst.msk [vmem:[#allocation4] sm:$0xff] %vm15_vm0, %v93_v3  ;;  %51 = vperm.xlu1 %83, %v20_v4   ;;  %v45_v11 = vand.u32 127, %v44_v9 }
   0x8   :  { %v21_v5 = vld [vmem:[#allocation2] sm:$0xff] }
   0x9   :  { %v28_v22 = vld [vmem:[#allocation3] sm:$0xff] }
   0xa   :  { %v49_v17 = vld [vmem:[#allocation4] sm:$0xff] }
  0x75   :  { %v23_v6 = vpop.xlane.xlu0 %22  ;;  %v52_v10 = vpop.permute.xlu1 %51 }
  0x76   :  { %v24_v7 = vmax.f32 %v21_v5, %v23_v6  ;;  %vm53_vm1 = vcmp.eq.s32.totalorder %v45_v11, %v52_v10 }
  0x77   :  { %v54_v12 = vsel %vm53_vm1, %v19_v0, 0.0 }
  0x78   :  { %v25_v8 = vsub.f32 %v21_v5, %v24_v7  ;;  %43 = vst.msk [vmem:[#allocation2] sm:$0xff] %vm15_vm0, %v24_v7  ;;  %32 = vperm.xlu0 %82, %v24_v7   ;;  %55 = vadd.xlane.f32.xlu2 %v54_v12 }
  0x7a   :  { %v26_v20 = vmul.f32 1.442695, %v25_v8 }
  0x7f   :  { %v62_v29 = vld [vmem:[#allocation2] sm:$0xff] }
  0xea   :  { %v33_v13 = vpop.permute.xlu0 %32 }
  0xeb   :  { %v35_v14 = vsub.f32 %v19_v0, %v33_v13  ;;  %v56_v18 = vpop.xlane.xlu2 %55 }
  0xec   :  { %v57_v19 = vadd.f32 %v56_v18, %v49_v17 }
  0xed   :  { %v36_v15 = vmul.f32 1.442695, %v35_v14 }
  0xee   :  { %58 = vst.msk [vmem:[#allocation4] sm:$0xff] %vm15_vm0, %v57_v19 }
  0xef   :  { %85 = vpow2.f32 %v36_v15 }
  0xf0   :  { %87 = vpow2.f32 %v26_v20 }
  0xf5   :  { %v86_v16 = vpop.eup %85  ;;  %v67_v30 = vld [vmem:[#allocation4] sm:$0xff] }
  0xf6   :  { %38 = vadd.xlane.f32.xlu1 %v86_v16  ;;  %v88_v21 = vpop.eup %87 }
  0xf7   :  { %v29_v23 = vmul.f32 %v88_v21, %v28_v22 }
 0x169   :  { %v39_v24 = vpop.xlane.xlu1 %38 }
 0x16a   :  { %v40_v25 = vadd.f32 %v39_v24, %v29_v23 }
 0x16c   :  { %42 = vst.msk [vmem:[#allocation3] sm:$0xff] %vm15_vm0, %v40_v25 }
 0x173   :  { %v63_v26 = vld [vmem:[#allocation3] sm:$0xff] }
 0x174   :  { %89 = vlog2.f32 %v63_v26 }
 0x17a   :  { %v90_v27 = vpop.eup %89 }
 0x17b   :  { %v65_v28 = vmul.f32 0.6931472, %v90_v27 }
 0x17d   :  { %v66_v31 = vadd.f32 %v65_v28, %v62_v29 }
 0x17f   :  { %v68_v32 = vsub.f32 %v66_v31, %v67_v30 }
 0x181   :  { %71 = vperm.xlu2 %84, %v68_v32  }
 0x1db   :  { %v72_v33 = vpop.permute.xlu2 %71 }
 0x1dc   :  { %74 = vst [vmem:[%s126_s2] sm:$0xff] %v72_v33 }

</bundles_post_ra>
